<compile_context>
chip_gen: v6e
topology: v6e:2x2x1
jax: 0.10.0
libtpu: 0.0.40
codegen_flags: <defaults>
</compile_context>

<pallas_src>
import functools
import math

import jax
import jax.numpy as jnp
from jax import lax
from jax.experimental import pallas as pl
from jax.experimental.pallas import tpu as pltpu


def _flash_attention_kernel(q_ref, k_ref, v_ref, o_ref,
                            m_sc, l_sc, acc_sc, *, scale, tq, tk):
    qi = pl.program_id(1)
    ki = pl.program_id(2)
    nk = pl.num_programs(2)

    @pl.when(ki == 0)
    def _init():
        m_sc[...] = jnp.full(m_sc.shape, -jnp.inf, jnp.float32)
        l_sc[...] = jnp.zeros(l_sc.shape, jnp.float32)
        acc_sc[...] = jnp.zeros(acc_sc.shape, jnp.float32)

    def _attend(apply_diag_mask):
        # Fold 1/sqrt(D) into Q (cheap (H, tq, D) multiply in the input dtype).
        q = q_ref[0] * jnp.asarray(scale, dtype=q_ref.dtype)   # (H, tq, D)
        k = k_ref[0]                                           # (H, tk, D)
        v = v_ref[0]                                           # (H, tk, D)

        # Batched-over-heads QK^T, contracting D directly; f32 MXU accumulation.
        s = jnp.einsum('hqd,hkd->hqk', q, k,
                       preferred_element_type=jnp.float32)     # (H, tq, tk) f32

        if apply_diag_mask:
            # Diagonal block: tq == tk and qi == ki, so the causal condition
            # reduces to row >= col within the block. Interior blocks skip this.
            row = lax.broadcasted_iota(jnp.int32, (tq, tk), 0)
            col = lax.broadcasted_iota(jnp.int32, (tq, tk), 1)
            s = jnp.where((row >= col)[None, :, :], s, -jnp.inf)

        m_prev = m_sc[...]                                     # (H, tq, 1)
        m_new = jnp.maximum(m_prev, jnp.max(s, axis=-1, keepdims=True))
        alpha = jnp.exp(m_prev - m_new)
        p = jnp.exp(s - m_new)                                 # (H, tq, tk) f32
        l_sc[...] = alpha * l_sc[...] + jnp.sum(p, axis=-1, keepdims=True)
        acc_sc[...] = alpha * acc_sc[...] + jnp.einsum(
            'hqk,hkd->hqd', p.astype(v.dtype), v,
            preferred_element_type=jnp.float32)
        m_sc[...] = m_new

    # Strictly-below-diagonal kv block: no mask work at all.
    @pl.when(ki < qi)
    def _interior():
        _attend(apply_diag_mask=False)

    # Diagonal kv block: apply the triangular mask.
    @pl.when(ki == qi)
    def _diagonal():
        _attend(apply_diag_mask=True)

    # kv blocks with ki > qi are fully masked under causality: skipped entirely.

    @pl.when(ki == nk - 1)
    def _finalize():
        # Deferred softmax normalization: reciprocal of the (H, tq, 1) denom,
        # then one (H, tq, D) multiply.
        inv_l = pl.reciprocal(l_sc[...], approx=False)
        o_ref[0] = (acc_sc[...] * inv_l).astype(o_ref.dtype)


def _pick_tile(T):
    for t in (256, 128, 64, 32, 16, 8):
        if T >= t and T % t == 0:
            return t
    return T  # tiny / irregular T: use the full sequence as one block


def standard_self_attention(Q, K, V, *, head_dim):
    """Pallas TPU implementation of StandardSelfAttention.forward."""
    B, H, T, D = Q.shape
    assert K.shape == (B, H, T, D) and V.shape == (B, H, T, D)
    assert D == head_dim
    scale = 1.0 / math.sqrt(head_dim)

    tile = _pick_tile(T)
    assert T % tile == 0, "sequence length must be divisible by the chosen tile"
    tq = tk = tile
    n_q = T // tq
    n_k = T // tk

    kernel = functools.partial(_flash_attention_kernel, scale=scale, tq=tq, tk=tk)

    q_spec = pl.BlockSpec((1, H, tq, D), lambda b, qi, ki: (b, 0, qi, 0))
    # Clamp the kv block index to the q block index: for ki > qi the block index
    # does not change across steps, so no new K/V DMA is issued for skipped blocks.
    kv_spec = pl.BlockSpec((1, H, tk, D),
                           lambda b, qi, ki: (b, 0, jnp.minimum(ki, qi), 0))
    out_spec = pl.BlockSpec((1, H, tq, D), lambda b, qi, ki: (b, 0, qi, 0))

    # TODO(synk): for very long T on v5e/v6e, keep the whole per-batch K/V
    # resident in VMEM scratch (manual DMA) to avoid re-streaming per q tile.
    return pl.pallas_call(
        kernel,
        out_shape=jax.ShapeDtypeStruct((B, H, T, D), Q.dtype),
        grid=(B, n_q, n_k),
        in_specs=[q_spec, kv_spec, kv_spec],
        out_specs=out_spec,
        scratch_shapes=[
            pltpu.VMEM((H, tq, 1), jnp.float32),   # running max m
            pltpu.VMEM((H, tq, 1), jnp.float32),   # running denominator l
            pltpu.VMEM((H, tq, D), jnp.float32),   # unnormalized output acc
        ],
        compiler_params=pltpu.CompilerParams(
            dimension_semantics=("parallel", "parallel", "arbitrary"),
            vmem_limit_bytes=32 * 1024 * 1024,
        ),
    )(Q, K, V)


def _reference(Q, K, V, head_dim):
    # pure-JAX reference mirroring the PyTorch forward
    T = Q.shape[2]
    scores = jnp.einsum("bhtd,bhsd->bhts", Q, K) / math.sqrt(head_dim)
    mask = jnp.tril(jnp.ones((T, T)))
    scores = jnp.where(mask == 0, -jnp.inf, scores)
    w = jax.nn.softmax(scores, axis=-1)
    return jnp.einsum("bhts,bhsd->bhtd", w, V)


if __name__ == "__main__":
    # module config: n_heads=4, head_dim=32, block_size=8 (== T here)
    B, H, T, D = 2, 4, 8, 32
    kq, kk, kv = jax.random.split(jax.random.PRNGKey(0), 3)
    Q = jax.random.normal(kq, (B, H, T, D), dtype=jnp.float32)
    K = jax.random.normal(kk, (B, H, T, D), dtype=jnp.float32)
    V = jax.random.normal(kv, (B, H, T, D), dtype=jnp.float32)

    out = jax.block_until_ready(standard_self_attention(Q, K, V, head_dim=D))
    ref = _reference(Q, K, V, D)
    assert out.shape == (B, H, T, D)
    assert jnp.allclose(out, ref, atol=1e-4, rtol=1e-4), "mismatch vs reference (T=8)"

    # larger sequence: exercises multi-tile online softmax + causal block skipping
    B2, H2, T2, D2 = 2, 4, 256, 32
    kq2, kk2, kv2 = jax.random.split(jax.random.PRNGKey(1), 3)
    Q2 = jax.random.normal(kq2, (B2, H2, T2, D2), dtype=jnp.float32)
    K2 = jax.random.normal(kk2, (B2, H2, T2, D2), dtype=jnp.float32)
    V2 = jax.random.normal(kv2, (B2, H2, T2, D2), dtype=jnp.float32)

    out2 = jax.block_until_ready(standard_self_attention(Q2, K2, V2, head_dim=D2))
    ref2 = _reference(Q2, K2, V2, D2)
    assert jnp.allclose(out2, ref2, atol=1e-4, rtol=1e-4), "mismatch vs reference (T=256)"

    print("KERNEL_OK")
</pallas_src>

<mosaic_0001>
module attributes {stable_mosaic.version = 11 : i64} {
  func.func @_flash_attention_kernel(%arg0: i32, %arg1: i32, %arg2: i32, %arg3: memref<1x4x8x32xf32, #tpu.memory_space<vmem>>, %arg4: memref<1x4x8x32xf32, #tpu.memory_space<vmem>>, %arg5: memref<1x4x8x32xf32, #tpu.memory_space<vmem>>, %arg6: memref<1x4x8x32xf32, #tpu.memory_space<vmem>>, %arg7: memref<4x8x1xf32, #tpu.memory_space<vmem>>, %arg8: memref<4x8x1xf32, #tpu.memory_space<vmem>>, %arg9: memref<4x8x32xf32, #tpu.memory_space<vmem>>) attributes {dimension_semantics = [#tpu.dimension_semantics<parallel>, #tpu.dimension_semantics<parallel>, #tpu.dimension_semantics<arbitrary>], iteration_bounds = array<i64: 2, 1, 1>, scalar_prefetch = 0 : i64, scratch_operands = 3 : i64, tpu.core_type = #tpu.core_type<tc>, window_params = [{transform_indices = @transform_0, window_bounds = array<i64: 1, 4, 8, 32>}, {transform_indices = @transform_1, window_bounds = array<i64: 1, 4, 8, 32>}, {transform_indices = @transform_2, window_bounds = array<i64: 1, 4, 8, 32>}, {transform_indices = @transform_3, window_bounds = array<i64: 1, 4, 8, 32>}]} {
    %c0_i32 = arith.constant 0 : i32
    %0 = arith.cmpi eq, %arg2, %c0_i32 : i32
    %1 = arith.extui %0 : i1 to i32
    %c0_i32_0 = arith.constant 0 : i32
    %2 = arith.cmpi ne, %1, %c0_i32_0 : i32
    scf.if %2 {
      %cst = arith.constant 0xFF800000 : f32
      %12 = vector.broadcast %cst : f32 to vector<4x8x1xf32>
      %c0 = arith.constant 0 : index
      %c0_5 = arith.constant 0 : index
      %c0_6 = arith.constant 0 : index
      %13 = vector.load %arg7[%c0, %c0_5, %c0_6] : memref<4x8x1xf32, #tpu.memory_space<vmem>>, vector<4x8x1xf32>
      tpu.vector_store %arg7[%c0, %c0_5, %c0_6], %12 {strides = array<i32>} : memref<4x8x1xf32, #tpu.memory_space<vmem>>, vector<4x8x1xf32>,
      %cst_7 = arith.constant 0.000000e+00 : f32
      %14 = vector.broadcast %cst_7 : f32 to vector<4x8x1xf32>
      %c0_8 = arith.constant 0 : index
      %c0_9 = arith.constant 0 : index
      %c0_10 = arith.constant 0 : index
      %15 = vector.load %arg8[%c0_8, %c0_9, %c0_10] : memref<4x8x1xf32, #tpu.memory_space<vmem>>, vector<4x8x1xf32>
      tpu.vector_store %arg8[%c0_8, %c0_9, %c0_10], %14 {strides = array<i32>} : memref<4x8x1xf32, #tpu.memory_space<vmem>>, vector<4x8x1xf32>,
      %cst_11 = arith.constant 0.000000e+00 : f32
      %16 = vector.broadcast %cst_11 : f32 to vector<4x8x32xf32>
      %c0_12 = arith.constant 0 : index
      %c0_13 = arith.constant 0 : index
      %c0_14 = arith.constant 0 : index
      %17 = vector.load %arg9[%c0_12, %c0_13, %c0_14] : memref<4x8x32xf32, #tpu.memory_space<vmem>>, vector<4x8x32xf32>
      tpu.vector_store %arg9[%c0_12, %c0_13, %c0_14], %16 {strides = array<i32>} : memref<4x8x32xf32, #tpu.memory_space<vmem>>, vector<4x8x32xf32>,
    } else {
    }
    %3 = arith.cmpi slt, %arg2, %arg1 : i32
    %4 = arith.extui %3 : i1 to i32
    %c0_i32_1 = arith.constant 0 : i32
    %5 = arith.cmpi ne, %4, %c0_i32_1 : i32
    scf.if %5 {
      %c0 = arith.constant 0 : index
      %c0_5 = arith.constant 0 : index
      %c0_6 = arith.constant 0 : index
      %c0_7 = arith.constant 0 : index
      %12 = vector.load %arg3[%c0, %c0_5, %c0_6, %c0_7] : memref<1x4x8x32xf32, #tpu.memory_space<vmem>>, vector<1x4x8x32xf32>
      %13 = vector.shape_cast %12 : vector<1x4x8x32xf32> to vector<4x8x32xf32>
      %cst = arith.constant 0.176776692 : f32
      %14 = vector.broadcast %cst : f32 to vector<4x8x32xf32>
      %15 = arith.mulf %13, %14 : vector<4x8x32xf32>
      %c0_8 = arith.constant 0 : index
      %c0_9 = arith.constant 0 : index
      %c0_10 = arith.constant 0 : index
      %c0_11 = arith.constant 0 : index
      %16 = vector.load %arg4[%c0_8, %c0_9, %c0_10, %c0_11] : memref<1x4x8x32xf32, #tpu.memory_space<vmem>>, vector<1x4x8x32xf32>
      %17 = vector.shape_cast %16 : vector<1x4x8x32xf32> to vector<4x8x32xf32>
      %c0_12 = arith.constant 0 : index
      %c0_13 = arith.constant 0 : index
      %c0_14 = arith.constant 0 : index
      %c0_15 = arith.constant 0 : index
      %18 = vector.load %arg5[%c0_12, %c0_13, %c0_14, %c0_15] : memref<1x4x8x32xf32, #tpu.memory_space<vmem>>, vector<1x4x8x32xf32>
      %19 = vector.shape_cast %18 : vector<1x4x8x32xf32> to vector<4x8x32xf32>
      "tpu.trace_start"() <{level = 10 : i32, message = "hqd,hkd->hqk"}> : () -> ()
      %cst_16 = arith.constant dense<0.000000e+00> : vector<4x8x8xf32>
      %20 = tpu.matmul %15, %17, %cst_16 {dimension_numbers = #tpu.dot_dimension_numbers<[2], [2], [1], [1], [0, 0, 0, 1, 1, 1], [0], [0]>} : vector<4x8x32xf32>, vector<4x8x32xf32>, vector<4x8x8xf32> -> vector<4x8x8xf32>
      "tpu.trace_stop"() : () -> ()
      %c0_17 = arith.constant 0 : index
      %c0_18 = arith.constant 0 : index
      %c0_19 = arith.constant 0 : index
      %21 = vector.load %arg7[%c0_17, %c0_18, %c0_19] : memref<4x8x1xf32, #tpu.memory_space<vmem>>, vector<4x8x1xf32>
      %cst_20 = arith.constant dense<0xFF800000> : vector<4x8xf32>
      %22 = vector.multi_reduction <maximumf>, %20, %cst_20 [2] : vector<4x8x8xf32> to vector<4x8xf32>
      %23 = vector.shape_cast %22 : vector<4x8xf32> to vector<4x8x1xf32>
      %24 = arith.maximumf %21, %23 : vector<4x8x1xf32>
      %25 = arith.subf %21, %24 : vector<4x8x1xf32>
      %26 = math.exp %25 : vector<4x8x1xf32>
      %27 = vector.broadcast %24 : vector<4x8x1xf32> to vector<4x8x8xf32>
      %28 = arith.subf %20, %27 : vector<4x8x8xf32>
      %29 = math.exp %28 : vector<4x8x8xf32>
      %c0_21 = arith.constant 0 : index
      %c0_22 = arith.constant 0 : index
      %c0_23 = arith.constant 0 : index
      %30 = vector.load %arg8[%c0_21, %c0_22, %c0_23] : memref<4x8x1xf32, #tpu.memory_space<vmem>>, vector<4x8x1xf32>
      %31 = arith.mulf %26, %30 : vector<4x8x1xf32>
      %cst_24 = arith.constant dense<0.000000e+00> : vector<4x8xf32>
      %32 = vector.multi_reduction <add>, %29, %cst_24 [2] : vector<4x8x8xf32> to vector<4x8xf32>
      %33 = vector.shape_cast %32 : vector<4x8xf32> to vector<4x8x1xf32>
      %34 = arith.addf %31, %33 : vector<4x8x1xf32>
      %c0_25 = arith.constant 0 : index
      %c0_26 = arith.constant 0 : index
      %c0_27 = arith.constant 0 : index
      %35 = vector.load %arg8[%c0_25, %c0_26, %c0_27] : memref<4x8x1xf32, #tpu.memory_space<vmem>>, vector<4x8x1xf32>
      tpu.vector_store %arg8[%c0_25, %c0_26, %c0_27], %34 {strides = array<i32>} : memref<4x8x1xf32, #tpu.memory_space<vmem>>, vector<4x8x1xf32>,
      %c0_28 = arith.constant 0 : index
      %c0_29 = arith.constant 0 : index
      %c0_30 = arith.constant 0 : index
      %36 = vector.load %arg9[%c0_28, %c0_29, %c0_30] : memref<4x8x32xf32, #tpu.memory_space<vmem>>, vector<4x8x32xf32>
      %37 = vector.broadcast %26 : vector<4x8x1xf32> to vector<4x8x32xf32>
      %38 = arith.mulf %37, %36 : vector<4x8x32xf32>
      "tpu.trace_start"() <{level = 10 : i32, message = "hqk,hkd->hqd"}> : () -> ()
      %cst_31 = arith.constant dense<0.000000e+00> : vector<4x8x32xf32>
      %39 = tpu.matmul %29, %19, %cst_31 {dimension_numbers = #tpu.dot_dimension_numbers<[2], [1], [1], [2], [0, 0, 0, 1, 1, 2], [0], [0]>} : vector<4x8x8xf32>, vector<4x8x32xf32>, vector<4x8x32xf32> -> vector<4x8x32xf32>
      "tpu.trace_stop"() : () -> ()
      %40 = arith.addf %38, %39 : vector<4x8x32xf32>
      %c0_32 = arith.constant 0 : index
      %c0_33 = arith.constant 0 : index
      %c0_34 = arith.constant 0 : index
      %41 = vector.load %arg9[%c0_32, %c0_33, %c0_34] : memref<4x8x32xf32, #tpu.memory_space<vmem>>, vector<4x8x32xf32>
      tpu.vector_store %arg9[%c0_32, %c0_33, %c0_34], %40 {strides = array<i32>} : memref<4x8x32xf32, #tpu.memory_space<vmem>>, vector<4x8x32xf32>,
      %c0_35 = arith.constant 0 : index
      %c0_36 = arith.constant 0 : index
      %c0_37 = arith.constant 0 : index
      %42 = vector.load %arg7[%c0_35, %c0_36, %c0_37] : memref<4x8x1xf32, #tpu.memory_space<vmem>>, vector<4x8x1xf32>
      tpu.vector_store %arg7[%c0_35, %c0_36, %c0_37], %24 {strides = array<i32>} : memref<4x8x1xf32, #tpu.memory_space<vmem>>, vector<4x8x1xf32>,
    } else {
    }
    %6 = arith.cmpi eq, %arg2, %arg1 : i32
    %7 = arith.extui %6 : i1 to i32
    %c0_i32_2 = arith.constant 0 : i32
    %8 = arith.cmpi ne, %7, %c0_i32_2 : i32
    scf.if %8 {
      %c0 = arith.constant 0 : index
      %c0_5 = arith.constant 0 : index
      %c0_6 = arith.constant 0 : index
      %c0_7 = arith.constant 0 : index
      %12 = vector.load %arg3[%c0, %c0_5, %c0_6, %c0_7] : memref<1x4x8x32xf32, #tpu.memory_space<vmem>>, vector<1x4x8x32xf32>
      %13 = vector.shape_cast %12 : vector<1x4x8x32xf32> to vector<4x8x32xf32>
      %cst = arith.constant 0.176776692 : f32
      %14 = vector.broadcast %cst : f32 to vector<4x8x32xf32>
      %15 = arith.mulf %13, %14 : vector<4x8x32xf32>
      %c0_8 = arith.constant 0 : index
      %c0_9 = arith.constant 0 : index
      %c0_10 = arith.constant 0 : index
      %c0_11 = arith.constant 0 : index
      %16 = vector.load %arg4[%c0_8, %c0_9, %c0_10, %c0_11] : memref<1x4x8x32xf32, #tpu.memory_space<vmem>>, vector<1x4x8x32xf32>
      %17 = vector.shape_cast %16 : vector<1x4x8x32xf32> to vector<4x8x32xf32>
      %c0_12 = arith.constant 0 : index
      %c0_13 = arith.constant 0 : index
      %c0_14 = arith.constant 0 : index
      %c0_15 = arith.constant 0 : index
      %18 = vector.load %arg5[%c0_12, %c0_13, %c0_14, %c0_15] : memref<1x4x8x32xf32, #tpu.memory_space<vmem>>, vector<1x4x8x32xf32>
      %19 = vector.shape_cast %18 : vector<1x4x8x32xf32> to vector<4x8x32xf32>
      "tpu.trace_start"() <{level = 10 : i32, message = "hqd,hkd->hqk"}> : () -> ()
      %cst_16 = arith.constant dense<0.000000e+00> : vector<4x8x8xf32>
      %20 = tpu.matmul %15, %17, %cst_16 {dimension_numbers = #tpu.dot_dimension_numbers<[2], [2], [1], [1], [0, 0, 0, 1, 1, 1], [0], [0]>} : vector<4x8x32xf32>, vector<4x8x32xf32>, vector<4x8x8xf32> -> vector<4x8x8xf32>
      "tpu.trace_stop"() : () -> ()
      %21 = tpu.iota {dimensions = array<i32: 0>} : vector<8x8xi32>
      %22 = tpu.iota {dimensions = array<i32: 1>} : vector<8x8xi32>
      %23 = arith.cmpi sge, %21, %22 : vector<8x8xi32>
      %24 = vector.shape_cast %23 : vector<8x8xi1> to vector<1x8x8xi1>
      %cst_17 = arith.constant 0xFF800000 : f32
      %25 = vector.shape_cast %24 : vector<1x8x8xi1> to vector<1x8x8xi1>
      %26 = vector.broadcast %25 : vector<1x8x8xi1> to vector<4x8x8xi1>
      %27 = vector.broadcast %cst_17 : f32 to vector<4x8x8xf32>
      %28 = arith.select %26, %20, %27 : vector<4x8x8xi1>, vector<4x8x8xf32>
      %c0_18 = arith.constant 0 : index
      %c0_19 = arith.constant 0 : index
      %c0_20 = arith.constant 0 : index
      %29 = vector.load %arg7[%c0_18, %c0_19, %c0_20] : memref<4x8x1xf32, #tpu.memory_space<vmem>>, vector<4x8x1xf32>
      %cst_21 = arith.constant dense<0xFF800000> : vector<4x8xf32>
      %30 = vector.multi_reduction <maximumf>, %28, %cst_21 [2] : vector<4x8x8xf32> to vector<4x8xf32>
      %31 = vector.shape_cast %30 : vector<4x8xf32> to vector<4x8x1xf32>
      %32 = arith.maximumf %29, %31 : vector<4x8x1xf32>
      %33 = arith.subf %29, %32 : vector<4x8x1xf32>
      %34 = math.exp %33 : vector<4x8x1xf32>
      %35 = vector.broadcast %32 : vector<4x8x1xf32> to vector<4x8x8xf32>
      %36 = arith.subf %28, %35 : vector<4x8x8xf32>
      %37 = math.exp %36 : vector<4x8x8xf32>
      %c0_22 = arith.constant 0 : index
      %c0_23 = arith.constant 0 : index
      %c0_24 = arith.constant 0 : index
      %38 = vector.load %arg8[%c0_22, %c0_23, %c0_24] : memref<4x8x1xf32, #tpu.memory_space<vmem>>, vector<4x8x1xf32>
      %39 = arith.mulf %34, %38 : vector<4x8x1xf32>
      %cst_25 = arith.constant dense<0.000000e+00> : vector<4x8xf32>
      %40 = vector.multi_reduction <add>, %37, %cst_25 [2] : vector<4x8x8xf32> to vector<4x8xf32>
      %41 = vector.shape_cast %40 : vector<4x8xf32> to vector<4x8x1xf32>
      %42 = arith.addf %39, %41 : vector<4x8x1xf32>
      %c0_26 = arith.constant 0 : index
      %c0_27 = arith.constant 0 : index
      %c0_28 = arith.constant 0 : index
      %43 = vector.load %arg8[%c0_26, %c0_27, %c0_28] : memref<4x8x1xf32, #tpu.memory_space<vmem>>, vector<4x8x1xf32>
      tpu.vector_store %arg8[%c0_26, %c0_27, %c0_28], %42 {strides = array<i32>} : memref<4x8x1xf32, #tpu.memory_space<vmem>>, vector<4x8x1xf32>,
      %c0_29 = arith.constant 0 : index
      %c0_30 = arith.constant 0 : index
      %c0_31 = arith.constant 0 : index
      %44 = vector.load %arg9[%c0_29, %c0_30, %c0_31] : memref<4x8x32xf32, #tpu.memory_space<vmem>>, vector<4x8x32xf32>
      %45 = vector.broadcast %34 : vector<4x8x1xf32> to vector<4x8x32xf32>
      %46 = arith.mulf %45, %44 : vector<4x8x32xf32>
      "tpu.trace_start"() <{level = 10 : i32, message = "hqk,hkd->hqd"}> : () -> ()
      %cst_32 = arith.constant dense<0.000000e+00> : vector<4x8x32xf32>
      %47 = tpu.matmul %37, %19, %cst_32 {dimension_numbers = #tpu.dot_dimension_numbers<[2], [1], [1], [2], [0, 0, 0, 1, 1, 2], [0], [0]>} : vector<4x8x8xf32>, vector<4x8x32xf32>, vector<4x8x32xf32> -> vector<4x8x32xf32>
      "tpu.trace_stop"() : () -> ()
      %48 = arith.addf %46, %47 : vector<4x8x32xf32>
      %c0_33 = arith.constant 0 : index
      %c0_34 = arith.constant 0 : index
      %c0_35 = arith.constant 0 : index
      %49 = vector.load %arg9[%c0_33, %c0_34, %c0_35] : memref<4x8x32xf32, #tpu.memory_space<vmem>>, vector<4x8x32xf32>
      tpu.vector_store %arg9[%c0_33, %c0_34, %c0_35], %48 {strides = array<i32>} : memref<4x8x32xf32, #tpu.memory_space<vmem>>, vector<4x8x32xf32>,
      %c0_36 = arith.constant 0 : index
      %c0_37 = arith.constant 0 : index
      %c0_38 = arith.constant 0 : index
      %50 = vector.load %arg7[%c0_36, %c0_37, %c0_38] : memref<4x8x1xf32, #tpu.memory_space<vmem>>, vector<4x8x1xf32>
      tpu.vector_store %arg7[%c0_36, %c0_37, %c0_38], %32 {strides = array<i32>} : memref<4x8x1xf32, #tpu.memory_space<vmem>>, vector<4x8x1xf32>,
    } else {
    }
    %c0_i32_3 = arith.constant 0 : i32
    %9 = arith.cmpi eq, %arg2, %c0_i32_3 : i32
    %10 = arith.extui %9 : i1 to i32
    %c0_i32_4 = arith.constant 0 : i32
    %11 = arith.cmpi ne, %10, %c0_i32_4 : i32
    scf.if %11 {
      %c0 = arith.constant 0 : index
      %c0_5 = arith.constant 0 : index
      %c0_6 = arith.constant 0 : index
      %12 = vector.load %arg8[%c0, %c0_5, %c0_6] : memref<4x8x1xf32, #tpu.memory_space<vmem>>, vector<4x8x1xf32>
      %13 = tpu.reciprocal %12 : vector<4x8x1xf32> -> vector<4x8x1xf32>
      %c0_7 = arith.constant 0 : index
      %c0_8 = arith.constant 0 : index
      %c0_9 = arith.constant 0 : index
      %14 = vector.load %arg9[%c0_7, %c0_8, %c0_9] : memref<4x8x32xf32, #tpu.memory_space<vmem>>, vector<4x8x32xf32>
      %15 = vector.broadcast %13 : vector<4x8x1xf32> to vector<4x8x32xf32>
      %16 = arith.mulf %14, %15 : vector<4x8x32xf32>
      %c0_10 = arith.constant 0 : index
      %c0_11 = arith.constant 0 : index
      %c0_12 = arith.constant 0 : index
      %c0_13 = arith.constant 0 : index
      %17 = vector.load %arg6[%c0_10, %c0_11, %c0_12, %c0_13] : memref<1x4x8x32xf32, #tpu.memory_space<vmem>>, vector<1x4x8x32xf32>
      %18 = vector.shape_cast %17 : vector<1x4x8x32xf32> to vector<4x8x32xf32>
      %19 = vector.shape_cast %16 : vector<4x8x32xf32> to vector<1x4x8x32xf32>
      tpu.vector_store %arg6[%c0_10, %c0_11, %c0_12, %c0_13], %19 {strides = array<i32>} : memref<1x4x8x32xf32, #tpu.memory_space<vmem>>, vector<1x4x8x32xf32>,
    } else {
    }
    return
  }
  func.func @transform_0(%arg0: i32, %arg1: i32, %arg2: i32) -> (i32, i32, i32, i32) {
    %c0_i32 = arith.constant 0 : i32
    %c0_i32_0 = arith.constant 0 : i32
    %c0_i32_1 = arith.constant 0 : i32
    return %arg0, %c0_i32, %arg1, %c0_i32_0 : i32, i32, i32, i32
  }
  func.func @transform_1(%arg0: i32, %arg1: i32, %arg2: i32) -> (i32, i32, i32, i32) {
    %0 = arith.minsi %arg2, %arg1 : i32
    %c0_i32 = arith.constant 0 : i32
    %c0_i32_0 = arith.constant 0 : i32
    %c0_i32_1 = arith.constant 0 : i32
    return %arg0, %c0_i32, %0, %c0_i32_0 : i32, i32, i32, i32
  }
  func.func @transform_2(%arg0: i32, %arg1: i32, %arg2: i32) -> (i32, i32, i32, i32) {
    %0 = arith.minsi %arg2, %arg1 : i32
    %c0_i32 = arith.constant 0 : i32
    %c0_i32_0 = arith.constant 0 : i32
    %c0_i32_1 = arith.constant 0 : i32
    return %arg0, %c0_i32, %0, %c0_i32_0 : i32, i32, i32, i32
  }
  func.func @transform_3(%arg0: i32, %arg1: i32, %arg2: i32) -> (i32, i32, i32, i32) {
    %c0_i32 = arith.constant 0 : i32
    %c0_i32_0 = arith.constant 0 : i32
    %c0_i32_1 = arith.constant 0 : i32
    return %arg0, %c0_i32, %arg1, %c0_i32_0 : i32, i32, i32, i32
  }
}

</mosaic_0001>

<bundles_post_ra>
// kernel: tpu_custom_call.1
= control target key start
LH: loop header
LB: loop body
LE: loop exit
PB: predicated region body
PF: predicated region fallthrough
CT: control target
= control target key end

     0   :  { %s2776_s0 = inlined_call_operand.hbm [shape: f32[2,4,8,32], index: 0, kind: input, shape index: {}]   ;;  %s2777_s1 = inlined_call_operand.hbm [shape: f32[2,4,8,32], index: 1, kind: input, shape index: {}]   ;;  %s2778_s2 = inlined_call_operand.hbm [shape: f32[2,4,8,32], index: 2, kind: input, shape index: {}]   ;;  %s2779_s3 = inlined_call_operand.hbm [shape: f32[2,4,8,32], index: 3, kind: output, shape index: {}]  }
   0x1   :  { %2785 = sst [smem:[#allocation18_spill]] %s2777_s1 }
   0x2   :  { %8 = vsyncpa [#allocation6], 0 }
   0x3   :  { %10 = vsyncpa [#allocation6 + $0x1], 0 }
   0x4   :  { %11 = vsyncpa [#allocation9], 0 }
   0x5   :  { %13 = vsyncpa [#allocation9 + $0x1], 0 }
   0x6   :  { %14 = vsyncpa [#allocation7], 0 }
   0x7   :  { %16 = vsyncpa [#allocation7 + $0x1], 0  ;;  %s2452_s12 = smov 0   ;;  %s2454_s13 = smov 0  }
   0x8   :  { %s2456_s14 = smov 0   ;;  %s2458_s15 = smov 0  }
   0x9   :  { %s2460_s16 = smov 0   ;;  %s2462_s17 = smov 0  }
   0xa LB: > { %2786 = sst [smem:[#allocation15_spill]] %s2414_s16  ;;  %s2483_s18 = sadd.s32 4294967295, %s2418_s17   ;;  %s2418_s17 = sphi %s2462_s17, %s22_s17   ;;  %s2414_s16 = sphi %s2460_s16, %s2801_s16   ;;  %s2410_s15 = sphi %s2458_s15, %s2800_s15   ;;  %s2406_s14 = sphi %s2456_s14, %s2804_s14   ;;  %s2402_s13 = sphi %s2454_s13, %s2803_s13   ;;  %s2398_s12 = sphi %s2452_s12, %s2802_s12  }
   0xb   : > { %s2038_s19 = sadd.s32 4294967294, %s2418_s17   ;;  %s41_s20 = sadd.s32 1, %s2414_s16 }
   0xc   : > { %s50_s21 = sadd.s32 1, %s2406_s14  ;;  %p43_p0 = scmp.ge.s32.totalorder %s41_s20, 2 }
   0xd   : > { %p57_p1 = scmp.ne.s32.totalorder %s2406_s14, %s2402_s13  ;;  %p58_p2 = scmp.eq.s32.totalorder %s2418_s17, 0 }
   0xe   : > { %p63_p3 = scmp.ne.s32.totalorder %s2402_s13, %s2398_s12  ;;  %s2806_s20 = smov (%p43_p0, %s41_s20), 0 }
   0xf   : > { %2787 = sst [smem:[#allocation16_spill]] %s2806_s20  ;;  %p2495_p4 = por %p58_p2, %p57_p1 }
  0x10   : > { %p64_p5 = scmp.eq.s32.totalorder %s2483_s18, 0  ;;  %s45_s23 = ssub.s32 %s2414_s16, %s2806_s20 }
  0x11   : > { %p153_p6 = scmp.eq.s32.totalorder %s2483_s18, 1  ;;  %p48_p7 = scmp.eq.s32.totalorder %s45_s23, 0 }
  0x12   : > { %p2503_p8 = por %p64_p5, %p63_p3  ;;  %p159_p10 = scmp.eq.s32.totalorder %s2038_s19, 1 }
  0x13   : > { %p2507_p9 = por %p153_p6, %p57_p1  ;;  %p2166_p13 = scmp.lt.s32.totalorder %s2418_s17, 2 }
  0x14   : > { %s2512_s26 = scalar_select %p48_p7, %s2406_s14, %s50_s21  }
  0x15   : > { %p2514_p11 = por %p159_p10, %p63_p3  ;;  %s2780_s28 = sand.u32 1, %s2406_s14  }
  0x16   : > { %2791 = sst [smem:[#allocation17_spill]] %s2512_s26  ;;  %s2523_s29 = sshll.u32 %s2780_s28, 5 }
  0x17   : > { %s2526_s30 = sshll.u32 %s2414_s16, 9  ;;  %p2530_p0 = pnand %p2166_p13, %p2495_p4 }
  0x18   : > { %s201_s5 = sand.u32 1, %s2418_s17   ;;  %s2794_s1 = sld [smem:[#allocation18_spill]] }
  0x19   : > { %s205_s9 = scalar_lea.vmem [#allocation8], %s2523_s29  ;;  %p2050_p1 = scmp.ge.s32.totalorder %s2418_s17, 1 }
  0x1a   : > { %s215_s10 = sshll.u32 %s205_s9, 4  ;;  %p247_p2 = scmp.lt.s32.totalorder %s2418_s17, 3  ;;  %s216_s10 = int_to_ptr.vmem [resolvable:$true] %s215_s10 }
  0x1b   : > { %s2542_s11 = scalar_lea.sflag [#allocation9], %s201_s5  ;;  %p2252_p3 = pneg %p2530_p0 }
  0x1c   : > { %s2263_s19 = scalar_lea.vmem %s216_s10, 512  ;;  %s2420_s21 = smov [#allocation8]  }
  0x1d   : > { %p2264_p4 = scmp.ne.s32.totalorder %s216_s10, %s2263_s19  ;;  %s2268_s22 = sshll.u32 %s2420_s21, 4  ;;  %s2269_s22 = int_to_ptr.vmem [resolvable:$false] %s2268_s22 }
  0x1e   : > { %s214_s8 = scalar_lea.hbm %s2794_s1, %s2526_s30  ;;  %s2270_s23 = scalar_lea.vmem %s2269_s22, 1024 }
  0x1f   : > { %p2266_p5 = pnand %p2264_p4, %p2252_p3  ;;  %p2271_p7 = scmp.lt.s32.totalorder %s216_s10, %s2269_s22 }
  0x20   : > { %p2272_p10 = scmp.lt.s32.totalorder %s2270_s23, %s2263_s19 }
  0x21   : > { %p2267_p6 = pneg %p2266_p5 }
  0x22   : > { %p2273_p13 = por %p2272_p10, %p2271_p7 }
  0x24   : > { %p2274_p12 = pnand %p2273_p13, %p2267_p6 }
  0x26   : > { %2277 = shalt.err (!%p2274_p12)
}
  0x27   : > { %s2783_s6 = smov 128   ;;  %s2422_s5 = smov 8  }
  0x28   : > { %2158 = dma.hbm_to_vmem [thread:$0]  (!%p2530_p0), %s214_s8, 512, %s216_s10, %s2542_s11, %s2783_s6, %s2783_s6, %s2422_s5  }
  0x29   : > { %p2559_p4 = pnand %p2050_p1, %p247_p2  ;;  %s190_s21 = scalar_lea.hbm %s2776_s0, %s2526_s30 }
  0x2a   : > { %s183_s22 = scalar_lea.vmem [#allocation5], %s2523_s29  ;;  %s238_s20 = scalar_lea.hbm %s2778_s2, %s2526_s30 }
  0x2b   : > { %s191_s23 = sshll.u32 %s183_s22, 4  ;;  %s2796_s16 = sand.u32 1, %s2406_s14   ;;  %s192_s23 = int_to_ptr.vmem [resolvable:$true] %s191_s23 }
  0x2c   : > { %s180_s26 = scalar_lea.sflag [#allocation6], %s2796_s16  ;;  %s2291_s8 = scalar_lea.vmem %s192_s23, 512 }
  0x2d   : > { %p2292_p12 = scmp.ne.s32.totalorder %s192_s23, %s2291_s8  ;;  %s2423_s10 = smov [#allocation5]  }
  0x2e   : > { %s2296_s6 = sshll.u32 %s2423_s10, 4  ;;  %s2297_s6 = int_to_ptr.vmem [resolvable:$false] %s2296_s6 }
  0x2f   : > { %p2294_p1 = pnand %p2292_p12, %p2252_p3  ;;  %s2298_s9 = scalar_lea.vmem %s2297_s6, 1024 }
  0x30   : > { %p2299_p5 = scmp.lt.s32.totalorder %s192_s23, %s2297_s6  ;;  %p2300_p6 = scmp.lt.s32.totalorder %s2298_s9, %s2291_s8 }
  0x31   : > { %p2295_p2 = pneg %p2294_p1 }
  0x32   : > { %p2301_p7 = por %p2300_p6, %p2299_p5 }
  0x34   : > { %p2302_p10 = pnand %p2301_p7, %p2295_p2 }
  0x36   : > { %2305 = shalt.err (!%p2302_p10)
}
  0x37   : > { %s2797_s1 = smov 128   ;;  %s229_s16 = scalar_lea.vmem [#allocation10], %s2523_s29 }
  0x38   : > { %2155 = dma.hbm_to_vmem [thread:$0]  (!%p2530_p0), %s190_s21, 512, %s192_s23, %s180_s26, %s2797_s1, %s2797_s1, %s2422_s5  }
  0x39   : > { %s239_s28 = sshll.u32 %s229_s16, 4  ;;  %s2424_s6 = smov [#allocation10]   ;;  %s240_s28 = int_to_ptr.vmem [resolvable:$true] %s239_s28 }
  0x3a   : > { %s2319_s19 = scalar_lea.vmem %s240_s28, 512  ;;  %s2324_s22 = sshll.u32 %s2424_s6, 4  ;;  %s2325_s22 = int_to_ptr.vmem [resolvable:$false] %s2324_s22 }
  0x3b   : > { %p2320_p13 = scmp.ne.s32.totalorder %s240_s28, %s2319_s19  ;;  %s2326_s8 = scalar_lea.vmem %s2325_s22, 1024 }
  0x3c   : > { %p2327_p2 = scmp.lt.s32.totalorder %s240_s28, %s2325_s22  ;;  %p2328_p5 = scmp.lt.s32.totalorder %s2326_s8, %s2319_s19 }
  0x3d   : > { %p2322_p12 = pnand %p2320_p13, %p2252_p3 }
  0x3e   : > { %p2329_p6 = por %p2328_p5, %p2327_p2 }
  0x3f   : > { %p2323_p1 = pneg %p2322_p12 }
  0x41   : > { %p2330_p7 = pnand %p2329_p6, %p2323_p1 }
  0x43   : > { %2333 = shalt.err (!%p2330_p7)
}
  0x44   : > { %2161 = dma.hbm_to_vmem [thread:$0]  (!%p2530_p0), %s238_s20, 512, %s240_s28, %s2542_s11, %s2797_s1, %s2797_s1, %s2422_s5  }
  0x45   : > { %251 = sbr.rel (%p2559_p4) target bundleno = 876 (0x36c), region = 32  ;;  %s2600_s21 = sand.u32 (!%p2559_p4), 1, %s2402_s13  }
  0x46   : > { %s2603_s4 = sshll.u32 (!%p2559_p4), %s2600_s21, 5  ;;  %s254_s23 = scalar_lea.sflag (!%p2559_p4), [#allocation6], %s2600_s21 }
  0x47   : > { %s2607_s10 = scalar_lea.vmem (!%p2559_p4), [#allocation5], %s2603_s4 }
  0x4a   : > { %2385 = dma.done.wait (%p2503_p8), %s254_s23, 512  }
  0x4b   : > { %2387 = vsyncadd (%p2503_p8), %s254_s23, 4294966784  ;;  %s262_s20 = sand.u32 1, %s2483_s18   ;;  %s266_s11 = scalar_lea.vmem [#allocation8], %s2603_s4 }
  0x4c   : > { %s263_s30 = scalar_lea.sflag [#allocation9], %s262_s20 }
  0x4d   : > { %2389 = dma.done.wait (%p2503_p8), %s263_s30, 1024  }
  0x4e   : > { %2391 = vsyncadd (%p2503_p8), %s263_s30, 4294966272  ;;  %vm325_vm0 = vcmask 261120   ;;  %v2425_v0 = vmov 0.0   ;;  %vm2426_vm1 = vmmov 0   ;;  %v1093_v1 = vld [vmem:[%s266_s11] sm:$0xff]  ;;  %v1094_v2 = vld [vmem:[%s266_s11 + $0x8] sm:$0xff]  ;;  %v1406_v14 = vlaneseq }
  0x4f   : > { %2104 = vmatprep.subr.mxu0 %v2425_v0  ;;  %326 = vst.msk [vmem:[#allocation4] sm:$0xff] %vm325_vm0, %v2425_v0  ;;  %327 = vst.msk [vmem:[#allocation4 + $0x8] sm:$0xff] %vm325_vm0, %v2425_v0  ;;  %2109 = vmatprep.subr.mxu1 %v2425_v0  ;;  %v1085_v3 = vld [vmem:[%s2607_s10] sm:$0xff]  ;;  %v1086_v5 = vld [vmem:[%s2607_s10 + $0x8] sm:$0xff]  ;;  %vm316_vm2 = vcmask 7168   ;;  %v2427_v13 = vmov -inf  }
  0x50   : > { %328 = vst.msk [vmem:[#allocation4 + $0x10] sm:$0xff] %vm325_vm0, %v2425_v0  ;;  %329 = vst.msk [vmem:[#allocation4 + $0x18] sm:$0xff] %vm325_vm0, %v2425_v0  ;;  %2106 = vmatprep.mubr.msk.f32.mxu0 %vm2426_vm1, %v2425_v0  ;;  %2111 = vmatprep.mubr.msk.f32.mxu1 %vm2426_vm1, %v2425_v0  ;;  %v1089_v4 = vmul.f32 0.17677669, %v1085_v3  ;;  %v1087_v6 = vld [vmem:[%s2607_s10 + $0x10] sm:$0xff]  ;;  %v1088_v9 = vld [vmem:[%s2607_s10 + $0x18] sm:$0xff] }
  0x51   : > { %2105 = vmatpush3.xpose.msk.msra.mxu0 %vm325_vm0, %v1093_v1  ;;  %2110 = vmatpush3.xpose.msk.msra.mxu1 %vm325_vm0, %v1094_v2  ;;  %v1090_v7 = vmul.f32 0.17677669, %v1086_v5  ;;  %v1095_v8 = vld [vmem:[%s266_s11 + $0x10] sm:$0xff]  ;;  %v1096_v10 = vld [vmem:[%s266_s11 + $0x18] sm:$0xff]  ;;  %v1091_v11 = vmul.f32 0.17677669, %v1087_v6 }
  0x52   : > { %2114 = vmatprep.subr.mxu0 %v2425_v0  ;;  %2119 = vmatprep.subr.mxu1 %v2425_v0  ;;  %v1092_v12 = vmul.f32 0.17677669, %v1088_v9  ;;  %317 = vst.msk [vmem:[#allocation2] sm:$0xff] %vm316_vm2, %v2427_v13  ;;  %318 = vst.msk [vmem:[#allocation2 + $0x8] sm:$0xff] %vm316_vm2, %v2427_v13  ;;  %v1407_v15 = vshrl.u32 %v1406_v14, 7  ;;  %v1409_v16 = vand.u32 127, %v1406_v14 }
  0x53   : > { %319 = vst.msk [vmem:[#allocation2 + $0x10] sm:$0xff] %vm316_vm2, %v2427_v13  ;;  %320 = vst.msk [vmem:[#allocation2 + $0x18] sm:$0xff] %vm316_vm2, %v2427_v13  ;;  %vm1421_vm4 = vcmask 64512   ;;  %v2428_v33 = vmov 0   ;;  %s275_s18 = scalar_lea.vmem [#allocation10], %s2603_s4  ;;  %s307_s24 = scalar_lea.vmem [#allocation11], %s2603_s4 }
  0x54   : > { %2107 = vmatmul.mubr.msk.f32.vlgmr.msra.gmra.mxu0 %vm325_vm0, %v1089_v4  ;;  %2112 = vmatmul.mubr.msk.f32.vlgmr.msra.gmra.mxu1 %vm325_vm0, %v1090_v7  ;;  %321 = vst.msk [vmem:[#allocation3] sm:$0xff] %vm316_vm2, %v2425_v0  ;;  %322 = vst.msk [vmem:[#allocation3 + $0x8] sm:$0xff] %vm316_vm2, %v2425_v0  ;;  %vm1410_vm3 = vcmp.ge.s32.totalorder %v1407_v15, %v1409_v16  ;;  %v1097_v50 = vld [vmem:[%s275_s18] sm:$0xff]  ;;  %v1098_v51 = vld [vmem:[%s275_s18 + $0x8] sm:$0xff]  ;;  %s1902_s5 = sshll.u32 %s307_s24, 4  ;;  %s2087_s7 = sshll.u32 %s2410_s15, 9  ;;  %s2721_s5 = int_to_ptr.vmem [resolvable:$true] %s1902_s5 }
  0x55   : > { %2115 = vmatpush3.xpose.msk.msra.mxu0 %vm325_vm0, %v1095_v8  ;;  %2116 = vmatprep.mubr.msk.f32.mxu0 %vm2426_vm1, %v2425_v0  ;;  %323 = vst.msk [vmem:[#allocation3 + $0x10] sm:$0xff] %vm316_vm2, %v2425_v0  ;;  %324 = vst.msk [vmem:[#allocation3 + $0x18] sm:$0xff] %vm316_vm2, %v2425_v0  ;;  %v1099_v1 = vld [vmem:[%s275_s18 + $0x10] sm:$0xff]  ;;  %v1100_v4 = vld [vmem:[%s275_s18 + $0x18] sm:$0xff]  ;;  %s2727_s16 = scalar_lea.hbm %s2779_s3, %s2087_s7  ;;  %s1888_s28 = scalar_lea.sflag [#allocation7], %s2600_s21 }
  0x56   : > { %2120 = vmatpush3.xpose.msk.msra.mxu1 %vm325_vm0, %v1096_v10  ;;  %2121 = vmatprep.mubr.msk.f32.mxu1 %vm2426_vm1, %v2425_v0  ;;  %s2334_s19 = scalar_lea.vmem %s2721_s5, 512  ;;  %s2429_s15 = smov [#allocation11]  }
  0x57   : > { %2124 = vmatprep.subr.mxu0 %v2425_v0  ;;  %2129 = vmatprep.subr.mxu1 %v2425_v0  ;;  %p2335_p8 = scmp.ne.s32.totalorder %s2721_s5, %s2334_s19  ;;  %s2338_s6 = sshll.u32 %s2429_s15, 4  ;;  %s2339_s6 = int_to_ptr.vmem [resolvable:$false] %s2338_s6 }
  0x58   : > { %2117 = vmatmul.mubr.msk.f32.vlgmr.msra.gmra.mxu0 %vm325_vm0, %v1091_v11  ;;  %2224 = vset.pattern.permute.xlu0 %v2428_v33  ;;  %s2340_s22 = scalar_lea.vmem %s2339_s6, 1024  ;;  %p2341_p4 = scmp.lt.s32.totalorder %s2721_s5, %s2339_s6 }
  0x59   : > { %2122 = vmatmul.mubr.msk.f32.vlgmr.msra.gmra.mxu1 %vm325_vm0, %v1092_v12  ;;  %2126 = vmatprep.mubr.msk.f32.mxu0 %vm2426_vm1, %v2425_v0  ;;  %v2673_v34 = vld [vmem:[#allocation2] sm:$0xff]  ;;  %v1418_v37 = vld [vmem:[#allocation2 + $0x8] sm:$0xff]  ;;  %p2336_p0 = pnand %p2335_p8, %p2507_p9  ;;  %p2342_p10 = scmp.lt.s32.totalorder %s2340_s22, %s2334_s19 }
  0x5a   : > { %2131 = vmatprep.mubr.msk.f32.mxu1 %vm2426_vm1, %v2425_v0  ;;  %2225 = vset.pattern.permute.xlu1 %v2428_v33  ;;  %v2678_v38 = vld [vmem:[#allocation2 + $0x10] sm:$0xff]  ;;  %v2686_v44 = vld [vmem:[#allocation2 + $0x18] sm:$0xff] }
  0x5b   : > { %2125 = vmatpush3.msra.mxu0 %v1097_v50  ;;  %2130 = vmatpush3.msra.mxu1 %v1098_v51  ;;  %p2337_p3 = pneg %p2336_p0  ;;  %p2343_p13 = por %p2342_p10, %p2341_p4 }
  0x5c   : > { %2134 = vmatprep.subr.mxu0 %v2425_v0  ;;  %2139 = vmatprep.subr.mxu1 %v2425_v0 }
  0x5d   : > { %p2344_p12 = pnand %p2343_p13, %p2337_p3 }
 0x114   : > { %v1174_v17 = vpop.f32.mrf.mxu0  ;;  %v1250_v18 = vpop.f32.mrf.mxu1 }
 0x115   : > { %v1413_v19 = vsel %vm1410_vm3, %v1174_v17, -inf  ;;  %v1414_v20 = vsel %vm1410_vm3, %v1250_v18, -inf  ;;  %v1482_v18 = vld [vmem:[#allocation3] sm:$0xff] }
 0x116   : > { %v2108_v21 = vpop.f32.mrf.mxu0  ;;  %v1422_v22 = vsel %vm1421_vm4, %v1413_v19, -inf  ;;  %v2113_v23 = vpop.f32.mrf.mxu1  ;;  %v1425_v25 = vsel %vm1421_vm4, %v1414_v20, -inf }
 0x117   : > { %1423 = vmax.xlane.f32.xlu0 %v1422_v22  ;;  %v1483_v21 = vld [vmem:[#allocation3 + $0x8] sm:$0xff] }
 0x118   : > { %v1326_v24 = vpop.f32.mrf.mxu0 }
 0x119   : > { %v1415_v26 = vsel %vm1410_vm3, %v1326_v24, -inf  ;;  %v1402_v27 = vpop.f32.mrf.mxu1 }
 0x11a   : > { %v2118_v28 = vpop.f32.mrf.mxu0  ;;  %v1416_v29 = vsel %vm1410_vm3, %v1402_v27, -inf  ;;  %v1428_v30 = vsel %vm1421_vm4, %v1415_v26, -inf }
 0x11b   : > { %1426 = vmax.xlane.f32.xlu0 %v1425_v25  ;;  %1429 = vmax.xlane.f32.xlu1 %v1428_v30  ;;  %v2123_v31 = vpop.f32.mrf.mxu1  ;;  %v1431_v32 = vsel %vm1421_vm4, %v1416_v29, -inf  ;;  %v1484_v25 = vld [vmem:[#allocation3 + $0x10] sm:$0xff] }
 0x11f   : > { %1432 = vmax.xlane.f32.xlu1 %v1431_v32 }
 0x1a0   : > { %v1424_v35 = vpop.xlane.xlu0 %1423 }
 0x1a1   : > { %v2676_v36 = vmax.f32 %v2673_v34, %v1424_v35 }
 0x1a3   : > { %v1438_v39 = vsub.f32 %v2673_v34, %v2676_v36  ;;  %1839 = vst.msk [vmem:[#allocation2] sm:$0xff] %vm316_vm2, %v2676_v36  ;;  %1452 = vperm.xlu0 %2224, %v2676_v36  }
 0x1a4   : > { %v1427_v40 = vpop.xlane.xlu0 %1426  ;;  %v1430_v41 = vpop.xlane.xlu1 %1429 }
 0x1a5   : > { %v1435_v42 = vmax.f32 %v1418_v37, %v1427_v40  ;;  %v1436_v43 = vmax.f32 %v2678_v38, %v1430_v41  ;;  %v1442_v11 = vmul.f32 1.442695, %v1438_v39 }
 0x1a7   : > { %v1439_v45 = vsub.f32 %v1418_v37, %v1435_v42  ;;  %1840 = vst.msk [vmem:[#allocation2 + $0x8] sm:$0xff] %vm316_vm2, %v1435_v42  ;;  %1457 = vperm.xlu1 %2225, %v1435_v42   ;;  %v1440_v46 = vsub.f32 %v2678_v38, %v1436_v43  ;;  %1841 = vst.msk [vmem:[#allocation2 + $0x10] sm:$0xff] %vm316_vm2, %v1436_v43  ;;  %v1511_v42 = vld [vmem:[#allocation4] sm:$0xff] }
 0x1a8   : > { %v1433_v47 = vpop.xlane.xlu1 %1432 }
 0x1a9   : > { %v1437_v48 = vmax.f32 %v2686_v44, %v1433_v47  ;;  %v1444_v9 = vmul.f32 1.442695, %v1439_v45  ;;  %v1446_v13 = vmul.f32 1.442695, %v1440_v46  ;;  %v1512_v45 = vld [vmem:[#allocation4 + $0x8] sm:$0xff] }
 0x1ab   : > { %1462 = vperm.xlu1 %2225, %v1436_v43   ;;  %v1441_v49 = vsub.f32 %v2686_v44, %v1437_v48  ;;  %1842 = vst.msk [vmem:[#allocation2 + $0x18] sm:$0xff] %vm316_vm2, %v1437_v48 }
 0x1ad   : > { %v1448_v14 = vmul.f32 1.442695, %v1441_v49 }
 0x1af   : > { %1467 = vperm.xlu1 %2225, %v1437_v48  }
 0x21e   : > { %v1453_v52 = vpop.permute.xlu0 %1452 }
 0x21f   : > { %v1470_v53 = vsub.f32 %v1413_v19, %v1453_v52  ;;  %v1513_v52 = vld [vmem:[#allocation4 + $0x10] sm:$0xff] }
 0x221   : > { %v1474_v54 = vmul.f32 1.442695, %v1470_v53 }
 0x222   : > { %v1458_v55 = vpop.permute.xlu1 %1457 }
 0x223   : > { %2226 = vpow2.f32 %v1474_v54  ;;  %v1471_v56 = vsub.f32 %v1414_v20, %v1458_v55 }
 0x225   : > { %v1476_v57 = vmul.f32 1.442695, %v1471_v56 }
 0x226   : > { %v1463_v58 = vpop.permute.xlu1 %1462 }
 0x227   : > { %2228 = vpow2.f32 %v1476_v57  ;;  %v1472_v59 = vsub.f32 %v1415_v26, %v1463_v58  ;;  %v1514_v57 = vld [vmem:[#allocation4 + $0x18] sm:$0xff] }
 0x229   : > { %v1478_v60 = vmul.f32 1.442695, %v1472_v59 }
 0x22a   : > { %v1468_v61 = vpop.permute.xlu1 %1467 }
 0x22b   : > { %2230 = vpow2.f32 %v1478_v60  ;;  %v1473_v62 = vsub.f32 %v1416_v29, %v1468_v61  ;;  %v1485_v29 = vld [vmem:[#allocation3 + $0x18] sm:$0xff] }
 0x22d   : > { %v1480_v63 = vmul.f32 1.442695, %v1473_v62 }
 0x22f   : > { %2232 = vpow2.f32 %v1480_v63 }
 0x230   : > { %v2227_v2 = vpop.eup %2226  ;;  %2234 = vpow2.f32 %v1444_v9 }
 0x231   : > { %2127 = vmatmul.mubr.msk.f32.vlgmr.msra.gmra.mxu0 %vm1421_vm4, %v2227_v2  ;;  %v1490_v3 = vsel %vm1421_vm4, %v2227_v2, 0.0  ;;  %2236 = vpow2.f32 %v1442_v11 }
 0x232   : > { %1491 = vadd.xlane.f32.xlu1 %v1490_v3  ;;  %2135 = vmatpush3.msra.mxu0 %v1099_v1  ;;  %2238 = vpow2.f32 %v1446_v13 }
 0x233   : > { %2136 = vmatprep.mubr.msk.f32.mxu0 %vm2426_vm1, %v2425_v0  ;;  %2240 = vpow2.f32 %v1448_v14 }
 0x234   : > { %v2229_v5 = vpop.eup %2228 }
 0x235   : > { %2132 = vmatmul.mubr.msk.f32.vlgmr.msra.gmra.mxu1 %vm1421_vm4, %v2229_v5  ;;  %v1493_v6 = vsel %vm1421_vm4, %v2229_v5, 0.0 }
 0x236   : > { %1494 = vadd.xlane.f32.xlu0 %v1493_v6  ;;  %2140 = vmatpush3.msra.mxu1 %v1100_v4 }
 0x237   : > { %2141 = vmatprep.mubr.msk.f32.mxu1 %vm2426_vm1, %v2425_v0 }
 0x238   : > { %v2231_v7 = vpop.eup %2230 }
 0x239   : > { %2137 = vmatmul.mubr.msk.f32.vlgmr.msra.gmra.mxu0 %vm1421_vm4, %v2231_v7  ;;  %v1496_v8 = vsel %vm1421_vm4, %v2231_v7, 0.0 }
 0x23a   : > { %1497 = vadd.xlane.f32.xlu1 %v1496_v8 }
 0x23c   : > { %v2233_v10 = vpop.eup %2232 }
 0x23d   : > { %2142 = vmatmul.mubr.msk.f32.vlgmr.msra.gmra.mxu1 %vm1421_vm4, %v2233_v10  ;;  %v1499_v12 = vsel %vm1421_vm4, %v2233_v10, 0.0  ;;  %v2235_v0 = vpop.eup %2234 }
 0x23e   : > { %1500 = vadd.xlane.f32.xlu1 %v1499_v12  ;;  %v2237_v15 = vpop.eup %2236  ;;  %v1487_v23 = vmul.f32 %v2235_v0, %v1483_v21 }
 0x23f   : > { %v2239_v16 = vpop.eup %2238  ;;  %v1486_v19 = vmul.f32 %v2237_v15, %v1482_v18 }
 0x240   : > { %v2241_v17 = vpop.eup %2240  ;;  %v1488_v27 = vmul.f32 %v2239_v16, %v1484_v25 }
 0x241   : > { %v1489_v32 = vmul.f32 %v2241_v17, %v1485_v29 }
 0x24c   : > { %1522 = vperm.xlu0 %2224, %v2235_v0  }
 0x24f   : > { %1517 = vperm.xlu1 %2225, %v2237_v15  }
 0x253   : > { %1527 = vperm.xlu1 %2225, %v2239_v16  }
 0x257   : > { %1532 = vperm.xlu1 %2225, %v2241_v17  }
 0x2bb   : > { %v1492_v20 = vpop.xlane.xlu1 %1491 }
 0x2bc   : > { %v1502_v22 = vadd.f32 %v1492_v20, %v1486_v19 }
 0x2be   : > { %1507 = vst.msk [vmem:[#allocation3] sm:$0xff] %vm316_vm2, %v1502_v22 }
 0x2bf   : > { %v1495_v24 = vpop.xlane.xlu0 %1494 }
 0x2c0   : > { %v1503_v26 = vadd.f32 %v1495_v24, %v1487_v23 }
 0x2c2   : > { %1508 = vst.msk [vmem:[#allocation3 + $0x8] sm:$0xff] %vm316_vm2, %v1503_v26 }
 0x2c3   : > { %v1498_v28 = vpop.xlane.xlu1 %1497 }
 0x2c4   : > { %v1504_v30 = vadd.f32 %v1498_v28, %v1488_v27 }
 0x2c5   : > { %v1846_v31 = vld [vmem:[#allocation3] sm:$0xff] }
 0x2c6   : > { %1509 = vst.msk [vmem:[#allocation3 + $0x10] sm:$0xff] %vm316_vm2, %v1504_v30  ;;  %2242 = vrcp.f32 %v1846_v31 }
 0x2c7   : > { %v1501_v33 = vpop.xlane.xlu1 %1500  ;;  %v1523_v46 = vpop.permute.xlu0 %1522 }
 0x2c8   : > { %v1505_v34 = vadd.f32 %v1501_v33, %v1489_v32  ;;  %v1536_v51 = vmul.f32 %v1523_v46, %v1512_v45 }
 0x2c9   : > { %v1847_v35 = vld [vmem:[#allocation3 + $0x8] sm:$0xff] }
 0x2ca   : > { %1510 = vst.msk [vmem:[#allocation3 + $0x18] sm:$0xff] %vm316_vm2, %v1505_v34  ;;  %2244 = vrcp.f32 %v1847_v35 }
 0x2cb   : > { %v1518_v43 = vpop.permute.xlu1 %1517 }
 0x2cc   : > { %v1535_v44 = vmul.f32 %v1518_v43, %v1511_v42 }
 0x2cd   : > { %v1848_v36 = vld [vmem:[#allocation3 + $0x10] sm:$0xff] }
 0x2ce   : > { %2246 = vrcp.f32 %v1848_v36 }
 0x2cf   : > { %v1528_v49 = vpop.permute.xlu1 %1527 }
 0x2d0   : > { %v1537_v56 = vmul.f32 %v1528_v49, %v1513_v52 }
 0x2d1   : > { %v1849_v37 = vld [vmem:[#allocation3 + $0x18] sm:$0xff] }
 0x2d2   : > { %2248 = vrcp.f32 %v1849_v37 }
 0x2d3   : > { %v2243_v38 = vpop.eup %2242  ;;  %v1533_v58 = vpop.permute.xlu1 %1532 }
 0x2d4   : > { %1860 = vperm.xlu1 %2225, %v2243_v38   ;;  %v1538_v62 = vmul.f32 %v1533_v58, %v1514_v57 }
 0x2d7   : > { %v2245_v39 = vpop.eup %2244 }
 0x2d8   : > { %1865 = vperm.xlu0 %2224, %v2245_v39  }
 0x2db   : > { %v2247_v40 = vpop.eup %2246 }
 0x2dc   : > { %1870 = vperm.xlu1 %2225, %v2247_v40  }
 0x2df   : > { %v2249_v41 = vpop.eup %2248 }
 0x2e0   : > { %1875 = vperm.xlu0 %2224, %v2249_v41  }
 0x2f1   : > { %v1608_v47 = vpop.f32.mrf.mxu0 }
 0x2f2   : > { %v1831_v48 = vadd.f32 %v1608_v47, %v1535_v44 }
 0x2f3   : > { %v2128_v50 = vpop.f32.mrf.mxu0 }
 0x2f4   : > { %1835 = vst.msk [vmem:[#allocation4] sm:$0xff] %vm325_vm0, %v1831_v48 }
 0x2f5   : > { %v1681_v53 = vpop.f32.mrf.mxu1 }
 0x2f6   : > { %v1832_v54 = vadd.f32 %v1681_v53, %v1536_v51 }
 0x2f7   : > { %v2133_v55 = vpop.f32.mrf.mxu1 }
 0x2f8   : > { %1836 = vst.msk [vmem:[#allocation4 + $0x8] sm:$0xff] %vm325_vm0, %v1832_v54 }
 0x2f9   : > { %v1754_v59 = vpop.f32.mrf.mxu0 }
 0x2fa   : > { %v1833_v60 = vadd.f32 %v1754_v59, %v1537_v56 }
 0x2fb   : > { %v2138_v61 = vpop.f32.mrf.mxu0  ;;  %v1854_v3 = vld [vmem:[#allocation4] sm:$0xff] }
 0x2fc   : > { %1837 = vst.msk [vmem:[#allocation4 + $0x10] sm:$0xff] %vm325_vm0, %v1833_v60 }
 0x2fd   : > { %v1827_v63 = vpop.f32.mrf.mxu1 }
 0x2fe   : > { %v1834_v1 = vadd.f32 %v1827_v63, %v1538_v62 }
 0x2ff   : > { %v2143_v2 = vpop.f32.mrf.mxu1  ;;  %v1855_v6 = vld [vmem:[#allocation4 + $0x8] sm:$0xff] }
 0x300   : > { %1838 = vst.msk [vmem:[#allocation4 + $0x18] sm:$0xff] %vm325_vm0, %v1834_v1 }
 0x303   : > { %v1856_v9 = vld [vmem:[#allocation4 + $0x10] sm:$0xff] }
 0x307   : > { %v1857_v13 = vld [vmem:[#allocation4 + $0x18] sm:$0xff] }
 0x34f   : > { %v1861_v4 = vpop.permute.xlu1 %1860 }
 0x350   : > { %v1878_v5 = vmul.f32 %v1861_v4, %v1854_v3 }
 0x352   : > { %1883 = vst.msk [vmem:[%s307_s24] sm:$0xff] %vm325_vm0, %v1878_v5 }
 0x353   : > { %v1866_v7 = vpop.permute.xlu0 %1865 }
 0x354   : > { %v1879_v8 = vmul.f32 %v1866_v7, %v1855_v6 }
 0x356   : > { %1884 = vst.msk [vmem:[%s307_s24 + $0x8] sm:$0xff] %vm325_vm0, %v1879_v8 }
 0x357   : > { %v1871_v10 = vpop.permute.xlu1 %1870 }
 0x358   : > { %v1880_v11 = vmul.f32 %v1871_v10, %v1856_v9 }
 0x35a   : > { %1885 = vst.msk [vmem:[%s307_s24 + $0x10] sm:$0xff] %vm325_vm0, %v1880_v11 }
 0x35b   : > { %v1876_v12 = vpop.permute.xlu0 %1875 }
 0x35c   : > { %v1881_v14 = vmul.f32 %v1876_v12, %v1857_v13 }
 0x35e   : > { %1886 = vst.msk [vmem:[%s307_s24 + $0x18] sm:$0xff] %vm325_vm0, %v1881_v14 }
 0x35f   : > { %2347 = shalt.err (!%p2344_p12)
}
 0x360   : > { %s2348_s8 = scalar_lea.hbm %s2727_s16, 512  ;;  %s2352_s4 = scalar_lea.hbm %s2779_s3, 1024 }
 0x361   : > { %p2349_p1 = scmp.ne.s32.totalorder %s2727_s16, %s2348_s8  ;;  %p2353_p6 = scmp.lt.s32.totalorder %s2727_s16, %s2779_s3 }
 0x362   : > { %p2354_p7 = scmp.lt.s32.totalorder %s2352_s4, %s2348_s8 }
 0x363   : > { %p2350_p2 = pnand %p2349_p1, %p2507_p9 }
 0x364   : > { %p2355_p8 = por %p2354_p7, %p2353_p6 }
 0x365   : > { %p2351_p5 = pneg %p2350_p2 }
 0x367   : > { %p2356_p0 = pnand %p2355_p8, %p2351_p5 }
 0x369   : > { %2359 = shalt.err (!%p2356_p0)
}
 0x36a   : > { %s2430_s20 = smov 128   ;;  %s2431_s30 = smov 8  }
 0x36b   : > { %2150 = dma.vmem_to_hbm [thread:$0]  (%p2507_p9), %s2721_s5, 512, %s2727_s16, %s1888_s28, %s2430_s20, %s2430_s20, %s2431_s30  }
 0x36c PF: > { %s1917_s11 = sand.u32 1, %s2398_s12   ;;  %p2798_p3 = scmp.ge.s32.totalorder %s2418_s17, 2 }
 0x36d   : > { %s1918_s18 = scalar_lea.sflag [#allocation7], %s1917_s11 }
 0x36e   : > { %p2163_p4 = pnand %p2798_p3, %p2514_p11 }
 0x370   : > { %p2164_p10 = pneg %p2163_p4 }
 0x372   : > { %2393 = dma.done.wait (%p2164_p10), %s1918_s18, 512  }
 0x373   : > { %2395 = vsyncadd (%p2164_p10), %s1918_s18, 4294966784  ;;  %s22_s17 = sadd.s32 1, %s2418_s17   ;;  %s2799_s25 = sld [smem:[#allocation17_spill]] }
 0x374   : > { %p19_p13 = scmp.ge.s32.totalorder %s22_s17, 4   ;;  %s2800_s15 = sld [smem:[#allocation15_spill]] }
 0x375   : > { %s2801_s16 = sld [smem:[#allocation16_spill]]  ;;  %s2802_s12 = smov %s2402_s13 }
 0x376   : > { %s2803_s13 = smov %s2406_s14  ;;  %21 = sbr.rel (!%p19_p13) target bundleno = 10 (0xa), region = 117 }
 0x379   : > { %s2804_s14 = smov %s2799_s25 }
 0x37b   :  { %1923 = vsyncpa [#allocation6], 1 }
 0x37c   :  { %1925 = vsyncpa [#allocation6 + $0x1], 1 }
 0x37d   :  { %1926 = vsyncpa [#allocation9], 1 }
 0x37e   :  { %1928 = vsyncpa [#allocation9 + $0x1], 1 }
 0x37f   :  { %1929 = vsyncpa [#allocation7], 1 }
 0x380   :  { %1931 = vsyncpa [#allocation7 + $0x1], 1 }

</bundles_post_ra>
